<compile_context>
chip_gen: v5e
topology: v5e:2x2
jax: 0.10.0
libtpu: 0.0.40
codegen_flags: <defaults>
</compile_context>

<pallas_src>
import functools

import jax
import jax.numpy as jnp
from jax.experimental import pallas as pl
from jax.experimental.pallas import tpu as pltpu

LANE = 128


def _round_up(a, b):
    return -(-a // b) * b


def _vmem_limit_bytes():
    # Generation-aware VMEM budget: 128 MiB on v5e/v6e, 64 MiB per TC on v7x.
    try:
        cap = int(pltpu.get_tpu_info().vmem_capacity_bytes)
    except Exception:
        cap = 64 << 20
    return int(min(cap * 4 // 5, 110 << 20))


def _resident_spec(shape):
    """Grid-invariant (constant index_map) input: single-buffer when supported."""
    index_map = lambda i, k: (0,) * len(shape)
    if hasattr(pl, "Buffered"):
        try:
            return pl.BlockSpec(shape, index_map, pipeline_mode=pl.Buffered(1))
        except TypeError:
            pass
    return pl.BlockSpec(shape, index_map)


# ----------------------------------------------------------------------------
# Glue: dense scaled Laplacian, mirroring ChebConv.__norm__ (sym, lambda_max=2).
# The +I from get_laplacian and the fill_value=-1 self loops cancel, so
# L_hat = -D^{-1/2} A D^{-1/2}.  Values are scattered directly into a padded
# bf16 buffer (no f32 N^2 materialization, no pad/cast round trip).
# ----------------------------------------------------------------------------
def build_scaled_laplacian_padded(edge_index, edge_weight, num_nodes, padded_nodes,
                                  dtype=jnp.bfloat16):
    row, col = edge_index[0], edge_index[1]
    w = jnp.where(row != col, edge_weight.astype(jnp.float32), 0.0)   # remove_self_loops
    deg = jnp.zeros((num_nodes,), jnp.float32).at[row].add(w)
    deg_inv_sqrt = jnp.where(deg > 0, jax.lax.rsqrt(deg), 0.0)        # inf -> 0 (PyG)
    vals = (-deg_inv_sqrt[row] * w * deg_inv_sqrt[col]).astype(dtype)
    lap = jnp.zeros((padded_nodes, padded_nodes), dtype)
    return lap.at[row, col].add(vals)


# ----------------------------------------------------------------------------
# Kernel:
#   out[i-tile] = X[i-tile] @ W0^T + (sum_k L[i-tile,k-tile] @ X[k-tile]) @ W1^T + b
# grid = (row tiles, column tiles); reduction (column) axis last, "arbitrary".
# ----------------------------------------------------------------------------
def _cheb_kernel(lap_ref, x_ref, w0_ref, w1_ref, b_ref, o_ref, acc_ref, *, tm, tk):
    # All grid-position reads happen here, OUTSIDE any pl.when body; the cond
    # branches below only close over the computed values.
    i = pl.program_id(0)
    k = pl.program_id(1)
    nk = pl.num_programs(1)
    row_start = i * tm      # node-row offset of this output tile
    col_start = k * tk      # node-column offset of this Laplacian tile

    @pl.when(k == 0)
    def _init():
        acc_ref[...] = jnp.zeros_like(acc_ref)

    # Tx1 partial: (tm, tk) bf16 @ (tk, cin_p) bf16 -> f32 accumulation (MXU).
    xk = x_ref[pl.ds(col_start, tk), :]
    acc_ref[...] += jnp.dot(lap_ref[...], xk, preferred_element_type=jnp.float32)

    @pl.when(k == nk - 1)
    def _epilogue():
        x_i = x_ref[pl.ds(row_start, tm), :]                    # (tm, cin_p) bf16
        tx1 = acc_ref[...].astype(jnp.bfloat16)                 # (tm, cin_p)
        out = jnp.dot(x_i, w0_ref[...], preferred_element_type=jnp.float32)
        out = out + jnp.dot(tx1, w1_ref[...], preferred_element_type=jnp.float32)
        o_ref[...] = (out + b_ref[...]).astype(o_ref.dtype)     # lane-dense store


# ----------------------------------------------------------------------------
# Pallas kernel wrapper: out = X @ W0^T + (L_hat @ X) @ W1^T + b
# ----------------------------------------------------------------------------
def gnn_block_forward(x, edge_index, edge_attr, w0, w1, bias, *, tm=512, tk=2048):
    """x: (N, Cin) f32; edge_index: (2, E) i32; edge_attr: (E,) f32.
    w0, w1: (Cout, Cin) torch-Linear layout; bias: (Cout,).
    tm/tk: Laplacian row/column tile sizes (rounded to multiples of 128)."""
    N, Cin = x.shape
    Cout = w0.shape[0]

    cin_p = _round_up(Cin, LANE)
    cout_p = _round_up(Cout, LANE)
    n_lane = _round_up(N, LANE)

    # Tile clamping: multiples of 128, <= node extent; cap tm at half the node
    # extent so the "parallel" row axis has >= 2 tiles (both v7x TensorCores);
    # make the smaller tile divide the larger so padding is only to max(tm, tk).
    tm = max(LANE, min(_round_up(tm, LANE), n_lane))
    tk = max(LANE, min(_round_up(tk, LANE), n_lane))
    if n_lane >= 2 * LANE:
        tm = min(tm, _round_up(n_lane // 2, LANE))
    if tk >= tm:
        tk = (tk // tm) * tm
    else:
        tm = (tm // tk) * tk
    n_p = _round_up(N, max(tm, tk))
    gi, gk = n_p // tm, n_p // tk

    # Graph-normalization glue (irregular scatter) -> padded bf16 Laplacian.
    lap_p = build_scaled_laplacian_padded(edge_index, edge_attr, N, n_p)

    # Lane-dense bf16 features / weights, f32 bias (f32 accumulation in-kernel).
    x_p = jnp.pad(x.astype(jnp.float32),
                  ((0, n_p - N), (0, cin_p - Cin))).astype(jnp.bfloat16)
    w0t = jnp.pad(jnp.asarray(w0, jnp.float32).T,
                  ((0, cin_p - Cin), (0, cout_p - Cout))).astype(jnp.bfloat16)
    w1t = jnp.pad(jnp.asarray(w1, jnp.float32).T,
                  ((0, cin_p - Cin), (0, cout_p - Cout))).astype(jnp.bfloat16)
    b_p = jnp.pad(jnp.asarray(bias, jnp.float32), (0, cout_p - Cout)).reshape(1, cout_p)

    kernel = functools.partial(_cheb_kernel, tm=tm, tk=tk)

    out_p = pl.pallas_call(
        kernel,
        out_shape=jax.ShapeDtypeStruct((n_p, cout_p), jnp.float32),
        grid_spec=pltpu.PrefetchScalarGridSpec(
            num_scalar_prefetch=0,
            grid=(gi, gk),
            in_specs=[
                pl.BlockSpec((tm, tk), lambda i, k: (i, k)),   # lap: streamed, double-buffered
                _resident_spec((n_p, cin_p)),                  # x: resident bf16, DMA'd once
                _resident_spec((cin_p, cout_p)),               # W0^T (resident)
                _resident_spec((cin_p, cout_p)),               # W1^T (resident)
                _resident_spec((1, cout_p)),                   # bias (resident)
            ],
            out_specs=pl.BlockSpec((tm, cout_p), lambda i, k: (i, 0)),
            scratch_shapes=[pltpu.VMEM((tm, cin_p), jnp.float32)],  # Tx1 accumulator
        ),
        compiler_params=pltpu.CompilerParams(
            dimension_semantics=("parallel", "arbitrary"),     # row tiles across TCs (v7x)
            vmem_limit_bytes=_vmem_limit_bytes(),              # generation-aware budget
        ),
    )(lap_p, x_p, w0t, w1t, b_p)

    return out_p[:N, :Cout]


# ----------------------------------------------------------------------------
# Plain-JAX f32 reference (for correctness check)
# ----------------------------------------------------------------------------
def gnn_block_reference(x, edge_index, edge_attr, w0, w1, bias):
    N = x.shape[0]
    row, col = edge_index[0], edge_index[1]
    w = jnp.where(row != col, edge_attr.astype(jnp.float32), 0.0)
    deg = jnp.zeros((N,), jnp.float32).at[row].add(w)
    dis = jnp.where(deg > 0, jax.lax.rsqrt(deg), 0.0)
    vals = -dis[row] * w * dis[col]
    lap = jnp.zeros((N, N), jnp.float32).at[row, col].add(vals)
    tx1 = lap @ x
    return x @ w0.T + tx1 @ w1.T + bias[None, :]


if __name__ == "__main__":
    key = jax.random.PRNGKey(0)
    k_x, k_w0, k_w1, k_b, k_e = jax.random.split(key, 5)

    # Small shapes consistent with the module: N nodes, Cin -> Cout features.
    N, Cin, Cout = 256, 8, 8

    x = jax.random.normal(k_x, (N, Cin), dtype=jnp.float32)

    # Bidirectional ring graph + chords, positive edge weights.
    src = jnp.arange(N, dtype=jnp.int32)
    dst = (src + 1) % N
    rows = jnp.concatenate([src, dst, src, (src + 3) % N])
    cols = jnp.concatenate([dst, src, (src + 3) % N, src])
    edge_index = jnp.stack([rows, cols], axis=0)                 # (2, E)
    edge_attr = jax.random.uniform(k_e, (edge_index.shape[1],),
                                   minval=0.5, maxval=1.5).astype(jnp.float32)

    # Deterministic glorot-ish parameter init (ChebConv: 2 bias-free Linears + bias).
    scale = (6.0 / (Cin + Cout)) ** 0.5
    w0 = jax.random.uniform(k_w0, (Cout, Cin), minval=-scale, maxval=scale).astype(jnp.float32)
    w1 = jax.random.uniform(k_w1, (Cout, Cin), minval=-scale, maxval=scale).astype(jnp.float32)
    bias = jax.random.uniform(k_b, (Cout,), minval=-0.1, maxval=0.1).astype(jnp.float32)

    # Small tiles so the (row, k) grid and the pl.when init/epilogue are exercised.
    out = gnn_block_forward(x, edge_index, edge_attr, w0, w1, bias, tm=128, tk=128)
    out = jax.block_until_ready(out)

    ref = gnn_block_reference(x, edge_index, edge_attr, w0, w1, bias)
    assert out.shape == (N, Cout)
    # Tolerance relaxed for the bf16 Laplacian / feature stream (f32 accumulation).
    assert jnp.allclose(out, ref, atol=5e-2, rtol=5e-2), "Pallas output mismatch vs reference"

    print("KERNEL_OK")
</pallas_src>

<mosaic_0001>
module attributes {stable_mosaic.version = 11 : i64} {
  func.func @_cheb_kernel(%arg0: i32, %arg1: i32, %arg2: memref<128x128xbf16, #tpu.memory_space<vmem>>, %arg3: memref<256x128xbf16, #tpu.memory_space<vmem>>, %arg4: memref<128x128xbf16, #tpu.memory_space<vmem>>, %arg5: memref<128x128xbf16, #tpu.memory_space<vmem>>, %arg6: memref<1x128xf32, #tpu.memory_space<vmem>>, %arg7: memref<128x128xf32, #tpu.memory_space<vmem>>, %arg8: memref<128x128xf32, #tpu.memory_space<vmem>>) attributes {dimension_semantics = [#tpu.dimension_semantics<parallel>, #tpu.dimension_semantics<arbitrary>], iteration_bounds = array<i64: 2, 2>, scalar_prefetch = 0 : i64, scratch_operands = 1 : i64, tpu.core_type = #tpu.core_type<tc>, window_params = [{transform_indices = @transform_0, window_bounds = array<i64: 128, 128>}, {pipeline_mode = #tpu.pipeline_mode<synchronous>, transform_indices = @transform_1, window_bounds = array<i64: 256, 128>}, {pipeline_mode = #tpu.pipeline_mode<synchronous>, transform_indices = @transform_2, window_bounds = array<i64: 128, 128>}, {pipeline_mode = #tpu.pipeline_mode<synchronous>, transform_indices = @transform_3, window_bounds = array<i64: 128, 128>}, {pipeline_mode = #tpu.pipeline_mode<synchronous>, transform_indices = @transform_4, window_bounds = array<i64: 1, 128>}, {transform_indices = @transform_5, window_bounds = array<i64: 128, 128>}]} {
    %c128_i32 = arith.constant 128 : i32
    %0 = arith.muli %arg0, %c128_i32 : i32
    %c128_i32_0 = arith.constant 128 : i32
    %1 = arith.muli %arg1, %c128_i32_0 : i32
    %c0_i32 = arith.constant 0 : i32
    %2 = arith.cmpi eq, %arg1, %c0_i32 : i32
    %3 = arith.extui %2 : i1 to i32
    %c0_i32_1 = arith.constant 0 : i32
    %4 = arith.cmpi ne, %3, %c0_i32_1 : i32
    scf.if %4 {
      %cst_9 = arith.constant 0.000000e+00 : f32
      %15 = vector.broadcast %cst_9 : f32 to vector<128x128xf32>
      %c0_10 = arith.constant 0 : index
      %c0_11 = arith.constant 0 : index
      %16 = vector.load %arg8[%c0_10, %c0_11] : memref<128x128xf32, #tpu.memory_space<vmem>>, vector<128x128xf32>
      tpu.vector_store %arg8[%c0_10, %c0_11], %15 {strides = array<i32>} : memref<128x128xf32, #tpu.memory_space<vmem>>, vector<128x128xf32>,
    } else {
    }
    %5 = arith.index_cast %1 : i32 to index
    %c0 = arith.constant 0 : index
    %6 = vector.load %arg3[%5, %c0] : memref<256x128xbf16, #tpu.memory_space<vmem>>, vector<128x128xbf16>
    %c0_2 = arith.constant 0 : index
    %c0_3 = arith.constant 0 : index
    %7 = vector.load %arg8[%c0_2, %c0_3] : memref<128x128xf32, #tpu.memory_space<vmem>>, vector<128x128xf32>
    %c0_4 = arith.constant 0 : index
    %c0_5 = arith.constant 0 : index
    %8 = vector.load %arg2[%c0_4, %c0_5] : memref<128x128xbf16, #tpu.memory_space<vmem>>, vector<128x128xbf16>
    %cst = arith.constant dense<0.000000e+00> : vector<128x128xf32>
    %9 = tpu.matmul %8, %6, %cst {dimension_numbers = #tpu.dot_dimension_numbers<[1], [0], [0], [1], [0, 0, 1, 1], [], []>} : vector<128x128xbf16>, vector<128x128xbf16>, vector<128x128xf32> -> vector<128x128xf32>
    %10 = arith.addf %7, %9 : vector<128x128xf32>
    %c0_6 = arith.constant 0 : index
    %c0_7 = arith.constant 0 : index
    %11 = vector.load %arg8[%c0_6, %c0_7] : memref<128x128xf32, #tpu.memory_space<vmem>>, vector<128x128xf32>
    tpu.vector_store %arg8[%c0_6, %c0_7], %10 {strides = array<i32>} : memref<128x128xf32, #tpu.memory_space<vmem>>, vector<128x128xf32>,
    %c1_i32 = arith.constant 1 : i32
    %12 = arith.cmpi eq, %arg1, %c1_i32 : i32
    %13 = arith.extui %12 : i1 to i32
    %c0_i32_8 = arith.constant 0 : i32
    %14 = arith.cmpi ne, %13, %c0_i32_8 : i32
    scf.if %14 {
      %15 = arith.index_cast %0 : i32 to index
      %c0_9 = arith.constant 0 : index
      %16 = vector.load %arg3[%15, %c0_9] : memref<256x128xbf16, #tpu.memory_space<vmem>>, vector<128x128xbf16>
      %c0_10 = arith.constant 0 : index
      %c0_11 = arith.constant 0 : index
      %17 = vector.load %arg8[%c0_10, %c0_11] : memref<128x128xf32, #tpu.memory_space<vmem>>, vector<128x128xf32>
      %18 = arith.truncf %17 : vector<128x128xf32> to vector<128x128xbf16>
      %c0_12 = arith.constant 0 : index
      %c0_13 = arith.constant 0 : index
      %19 = vector.load %arg4[%c0_12, %c0_13] : memref<128x128xbf16, #tpu.memory_space<vmem>>, vector<128x128xbf16>
      %cst_14 = arith.constant dense<0.000000e+00> : vector<128x128xf32>
      %20 = tpu.matmul %16, %19, %cst_14 {dimension_numbers = #tpu.dot_dimension_numbers<[1], [0], [0], [1], [0, 0, 1, 1], [], []>} : vector<128x128xbf16>, vector<128x128xbf16>, vector<128x128xf32> -> vector<128x128xf32>
      %c0_15 = arith.constant 0 : index
      %c0_16 = arith.constant 0 : index
      %21 = vector.load %arg5[%c0_15, %c0_16] : memref<128x128xbf16, #tpu.memory_space<vmem>>, vector<128x128xbf16>
      %cst_17 = arith.constant dense<0.000000e+00> : vector<128x128xf32>
      %22 = tpu.matmul %18, %21, %cst_17 {dimension_numbers = #tpu.dot_dimension_numbers<[1], [0], [0], [1], [0, 0, 1, 1], [], []>} : vector<128x128xbf16>, vector<128x128xbf16>, vector<128x128xf32> -> vector<128x128xf32>
      %23 = arith.addf %20, %22 : vector<128x128xf32>
      %c0_18 = arith.constant 0 : index
      %c0_19 = arith.constant 0 : index
      %24 = vector.load %arg6[%c0_18, %c0_19] : memref<1x128xf32, #tpu.memory_space<vmem>>, vector<1x128xf32>
      %25 = vector.broadcast %24 : vector<1x128xf32> to vector<128x128xf32>
      %26 = arith.addf %23, %25 : vector<128x128xf32>
      %c0_20 = arith.constant 0 : index
      %c0_21 = arith.constant 0 : index
      %27 = vector.load %arg7[%c0_20, %c0_21] : memref<128x128xf32, #tpu.memory_space<vmem>>, vector<128x128xf32>
      tpu.vector_store %arg7[%c0_20, %c0_21], %26 {strides = array<i32>} : memref<128x128xf32, #tpu.memory_space<vmem>>, vector<128x128xf32>,
    } else {
    }
    return
  }
  func.func @transform_0(%arg0: i32, %arg1: i32) -> (i32, i32) {
    %c0_i32 = arith.constant 0 : i32
    return %arg0, %arg1 : i32, i32
  }
  func.func @transform_1(%arg0: i32, %arg1: i32) -> (i32, i32) {
    %c0_i32 = arith.constant 0 : i32
    %c0_i32_0 = arith.constant 0 : i32
    %c0_i32_1 = arith.constant 0 : i32
    return %c0_i32, %c0_i32_0 : i32, i32
  }
  func.func @transform_2(%arg0: i32, %arg1: i32) -> (i32, i32) {
    %c0_i32 = arith.constant 0 : i32
    %c0_i32_0 = arith.constant 0 : i32
    %c0_i32_1 = arith.constant 0 : i32
    return %c0_i32, %c0_i32_0 : i32, i32
  }
  func.func @transform_3(%arg0: i32, %arg1: i32) -> (i32, i32) {
    %c0_i32 = arith.constant 0 : i32
    %c0_i32_0 = arith.constant 0 : i32
    %c0_i32_1 = arith.constant 0 : i32
    return %c0_i32, %c0_i32_0 : i32, i32
  }
  func.func @transform_4(%arg0: i32, %arg1: i32) -> (i32, i32) {
    %c0_i32 = arith.constant 0 : i32
    %c0_i32_0 = arith.constant 0 : i32
    %c0_i32_1 = arith.constant 0 : i32
    return %c0_i32, %c0_i32_0 : i32, i32
  }
  func.func @transform_5(%arg0: i32, %arg1: i32) -> (i32, i32) {
    %c0_i32 = arith.constant 0 : i32
    %c0_i32_0 = arith.constant 0 : i32
    return %arg0, %c0_i32 : i32, i32
  }
}

</mosaic_0001>

<bundles_post_ra>
// kernel: tpu_custom_call.1
= control target key start
LH: loop header
LB: loop body
LE: loop exit
PB: predicated region body
PF: predicated region fallthrough
CT: control target
= control target key end

     0   :  { %s2061_s0 = inlined_call_operand.hbm [shape: bf16[256,256], index: 0, kind: input, shape index: {}]   ;;  %s2062_s1 = inlined_call_operand.hbm [shape: bf16[256,128], index: 1, kind: input, shape index: {}]   ;;  %s2063_s2 = inlined_call_operand.hbm [shape: bf16[128,128], index: 2, kind: input, shape index: {}]   ;;  %s2064_s3 = inlined_call_operand.hbm [shape: bf16[128,128], index: 3, kind: input, shape index: {}]   ;;  %s2065_s4 = inlined_call_operand.vmem [shape: f32[1,128], index: 4, kind: input, shape index: {}]   ;;  %s2066_s5 = inlined_call_operand.hbm [shape: f32[256,128], index: 5, kind: output, shape index: {}]  }
   0x1   :  { %2077 = sst [smem:[#allocation22_spill]] %s2062_s1 }
   0x2   :  { %2078 = sst [smem:[#allocation23_spill]] %s2063_s2 }
   0x3   :  { %2079 = sst [smem:[#allocation24_spill]] %s2064_s3 }
   0x4   :  { %2080 = sst [smem:[#allocation25_spill]] %s2065_s4 }
   0x5   :  { %2081 = sst [smem:[#allocation26_spill]] %s2066_s5 }
   0x6   :  { %10 = vsyncpa [#allocation4], 0 }
   0x7   :  { %12 = vsyncpa [#allocation4 + $0x1], 0 }
   0x8   :  { %13 = vsyncpa [#allocation7], 0 }
   0x9   :  { %14 = vsyncpa [#allocation10], 0 }
   0xa   :  { %15 = vsyncpa [#allocation5], 0 }
   0xb   :  { %17 = vsyncpa [#allocation5 + $0x1], 0  ;;  %s1758_s18 = smov 0   ;;  %s1760_s19 = smov 0  }
   0xc   :  { %s1762_s20 = smov 0   ;;  %s1764_s21 = smov 0  }
   0xd   :  { %s1766_s22 = smov 0   ;;  %s1768_s23 = smov 0  }
   0xe   :  { %s1770_s24 = smov 0   ;;  %s1772_s25 = smov 0  }
   0xf   :  { %s1774_s26 = smov 0   ;;  %s1776_s27 = smov 0  }
  0x10   :  { %s1778_s28 = smov 0  }
  0x11 LB: > { %2082 = sst [smem:[#allocation16_spill]] %s1677_s18  ;;  %s1057_s29 = sadd.s32 4294967295, %s1717_s28   ;;  %s1717_s28 = sphi %s1778_s28, %s23_s28   ;;  %s1713_s27 = sphi %s1776_s27, %s2118_s27   ;;  %s1709_s26 = sphi %s1774_s26, %s2117_s26   ;;  %s1705_s25 = sphi %s1772_s25, %s2116_s25   ;;  %s1701_s24 = sphi %s1770_s24, %s2115_s24   ;;  %s1697_s23 = sphi %s1768_s23, %s2114_s23   ;;  %s1693_s22 = sphi %s1766_s22, %s2113_s22   ;;  %s1689_s21 = sphi %s1764_s21, %s2112_s21   ;;  %s1685_s20 = sphi %s1762_s20, %s2111_s20   ;;  %s1681_s19 = sphi %s1760_s19, %s2110_s19   ;;  %s1677_s18 = sphi %s1758_s18, %s2109_s18  }
  0x12   : > { %2083 = sst [smem:[#allocation17_spill]] %s1701_s24  ;;  %s1058_s30 = sadd.s32 4294967294, %s1717_s28  }
  0x13   : > { %p57_p0 = scmp.ne.s32.totalorder %s1693_s22, %s1689_s21  ;;  %p1814_p1 = scmp.eq.s32.totalorder %s1057_s29, 0 }
  0x14   : > { %p164_p2 = scmp.ne.s32.totalorder %s1685_s20, %s1681_s19  ;;  %p165_p3 = scmp.eq.s32.totalorder %s1057_s29, 3 }
  0x15   : > { %p1822_p4 = por %p1814_p1, %p57_p0  ;;  %p170_p5 = scmp.ne.s32.totalorder %s1681_s19, %s1677_s18 }
  0x16   : > { %p1828_p6 = por %p165_p3, %p164_p2  ;;  %p171_p7 = scmp.eq.s32.totalorder %s1058_s30, 3 }
  0x17   : > { %p1059_p8 = scmp.ge.s32.totalorder %s1717_s28, 1  ;;  %p178_p9 = scmp.lt.s32.totalorder %s1717_s28, 5 }
  0x18   : > { %s2086_s8 = scalar_select %p1828_p6, 1, 0 }
  0x19   : > { %p1834_p10 = por %p171_p7, %p170_p5  ;;  %p1838_p11 = pnand %p1059_p8, %p178_p9 }
  0x1a   : > { %2087 = sst [smem:[#allocation18_spill]] %s2086_s8  ;;  %s1719_s14 = smov [#allocation6]  }
  0x1b   : > { %s2088_s9 = scalar_select %p1834_p10, 1, 0 }
  0x1c   : > { %s2091_s1 = sld [smem:[#allocation22_spill]]  ;;  %p1343_p12 = pneg %p1838_p11 }
  0x1d   : > { %2089 = sst [smem:[#allocation19_spill]] %s2088_s9  ;;  %s191_s15 = sshll.u32 %s1719_s14, 4  ;;  %s192_s15 = int_to_ptr.vmem [resolvable:$true] %s191_s15 }
  0x1e   : > { %p1849_p13 = pnand %p1343_p12, %p1814_p1  ;;  %s2093_s2 = sld [smem:[#allocation23_spill]] }
  0x1f   : > { %s2067_s30 = smov 64   ;;  %s2068_s11 = smov 4  }
  0x20   : > { %s2094_s3 = sld [smem:[#allocation24_spill]]  ;;  %s1722_s21 = smov [#allocation8]  }
  0x21   : > { %s35_s12 = sadd.s32 1, %s1713_s27  ;;  %s44_s14 = sadd.s32 1, %s1697_s23 }
  0x22   : > { %s189_s13 = sshll.u32 %s2091_s1, 4  ;;  %s205_s1 = sshll.u32 %s1722_s21, 4  ;;  %s190_s13 = int_to_ptr.hbm [resolvable:$true] %s189_s13  ;;  %s206_s1 = int_to_ptr.vmem [resolvable:$true] %s205_s1 }
  0x23   : > { %1346 = dma.hbm_to_vmem [thread:$0]  (!%p1849_p13), %s190_s13, 2048, %s192_s15, [#allocation7], %s2067_s30, %s2067_s30, %s2068_s11  }
  0x24   : > { %s203_s29 = sshll.u32 %s2093_s2, 4  ;;  %s1723_s2 = smov [#allocation9]   ;;  %s204_s29 = int_to_ptr.hbm [resolvable:$true] %s203_s29 }
  0x25   : > { %1349 = dma.hbm_to_vmem [thread:$0]  (!%p1849_p13), %s204_s29, 1024, %s206_s1, [#allocation7], %s2067_s30, %s2067_s30, %s2068_s11  }
  0x26   : > { %s217_s17 = sshll.u32 %s2094_s3, 4  ;;  %s219_s13 = sshll.u32 %s1723_s2, 4  ;;  %s218_s17 = int_to_ptr.hbm [resolvable:$true] %s217_s17  ;;  %s220_s13 = int_to_ptr.vmem [resolvable:$true] %s219_s13 }
  0x27   : > { %1352 = dma.hbm_to_vmem [thread:$0]  (!%p1849_p13), %s218_s17, 1024, %s220_s13, [#allocation10], %s2067_s30, %s2067_s30, %s2068_s11  }
  0x28   : > { %s32_s15 = sadd.s32 1, %s1709_s26  ;;  %p51_p2 = scmp.ne.s32.totalorder %s1697_s23, %s1693_s22 }
  0x29   : > { %p33_p0 = scmp.ge.s32.totalorder %s32_s15, 2  ;;  %p52_p3 = scmp.eq.s32.totalorder %s1717_s28, 0 }
  0x2a   : > { %s154_s16 = sadd.s32 1, %s1685_s20  ;;  %p1364_p8 = scmp.lt.s32.totalorder %s1717_s28, 4 }
  0x2b   : > { %s2120_s15 = smov (%p33_p0, %s32_s15), 0  ;;  %s2122_s12 = smov (!%p33_p0, %s35_s12), %s1713_s27 }
  0x2c   : > { %2095 = sst [smem:[#allocation20_spill]] %s2120_s15  ;;  %s40_s1 = ssub.s32 %s1709_s26, %s2120_s15 }
  0x2d   : > { %p1885_p5 = por %p52_p3, %p51_p2  ;;  %p37_p7 = scmp.ge.s32.totalorder %s2122_s12, 2 }
  0x2e   : > { %s236_s29 = sand.u32 1, %s1697_s23   ;;  %s1245_s30 = sshll.u32 %s1713_s27, 5 }
  0x2f   : > { %s2124_s12 = smov (%p37_p7, %s2122_s12), 0  ;;  %s1064_s17 = sshll.u32 %s236_s29, 6 }
  0x30   : > { %2097 = sst [smem:[#allocation21_spill]] %s2124_s12  ;;  %s39_s21 = ssub.s32 %s1713_s27, %s2124_s12 }
  0x31   : > { %s41_s13 = sor.u32 %s40_s1, %s39_s21  ;;  %p152_p9 = scmp.eq.s32.totalorder %s39_s21, 0 }
  0x32   : > { %p42_p12 = scmp.eq.s32.totalorder %s41_s13, 0  ;;  %s245_s15 = sadd.s32 %s1709_s26, %s1245_s30 }
  0x33   : > { %s1898_s11 = scalar_select %p152_p9, %s1685_s20, %s154_s16  }
  0x34   : > { %s1901_s3 = scalar_select %p42_p12, %s1697_s23, %s44_s14  }
  0x35   : > { %s240_s9 = scalar_lea.vmem [#allocation3], %s1064_s17  ;;  %s1067_s8 = sshll.u32 %s245_s15, 2 }
  0x36   : > { %s250_s18 = sshll.u32 %s240_s9, 4  ;;  %s247_s24 = scalar_lea.hbm %s2061_s0, %s1067_s8  ;;  %s251_s18 = int_to_ptr.vmem [resolvable:$true] %s250_s18 }
  0x37   : > { %p1354_p13 = pnand %p1364_p8, %p1885_p5  ;;  %s248_s1 = sshll.u32 %s247_s24, 4  ;;  %s249_s1 = int_to_ptr.hbm [resolvable:$true] %s248_s1 }
  0x38   : > { %s237_s21 = scalar_lea.sflag [#allocation4], %s236_s29  ;;  %s1724_s13 = smov 128  }
  0x39   : > { %s2098_s16 = smov 4   ;;  %s2099_s12 = smov 64  }
  0x3a   : > { %1356 = dma.hbm_to_vmem [thread:$0]  (!%p1354_p13), %s249_s1, 1024, %s251_s18, %s237_s21, %s1724_s13, %s2099_s12, %s2098_s16  }
  0x3b   : > { %262 = sbr.rel (%p1838_p11) target bundleno = 542 (0x21e), region = 40  ;;  %s264_s9 = sand.u32 (!%p1838_p11), 1, %s1693_s22  }
  0x3c   : > { %s1069_s30 = sshll.u32 (!%p1838_p11), %s264_s9, 6  ;;  %s265_s15 = scalar_lea.sflag (!%p1838_p11), [#allocation4], %s264_s9 }
  0x3d   : > { %s1916_s4 = scalar_lea.vmem (!%p1838_p11), [#allocation3], %s1069_s30 }
  0x40   : > { %1660 = dma.done.wait (%p1822_p4), %s265_s15, 1024  }
  0x41   : > { %1662 = vsyncadd (%p1822_p4), %s265_s15, 4294966272 }
  0x42   : > { %1664 = dma.done.wait (%p1814_p1), [#allocation7], 3072  }
  0x43   : > { %1666 = vsyncadd (%p1814_p1), [#allocation7], 4294964224 }
  0x44   : > { %1668 = dma.done.wait (%p1814_p1), [#allocation10], 1024  }
  0x45   : > { %1670 = vsyncadd (%p1814_p1), [#allocation10], 4294966272  ;;  %s2100_s5 = sld [smem:[#allocation17_spill]]  ;;  %s308_s18 = sand.u32 1, %s1681_s19  }
  0x46   : > { %s1074_s24 = sshll.u32 %s1705_s25, 7  ;;  %s1073_s7 = sshll.u32 %s308_s18, 7 }
  0x47   : > { %s1935_s10 = scalar_lea.vmem [#allocation11], %s1073_s7 }
  0x4b   : > { %s1075_s8 = sshll.u32 %s2100_s5, 7  ;;  %p1076_p4 = scmp.ne.s32.totalorder %s2100_s5, 0 }
  0x4d   : > { %318 = sbr.rel (%p1076_p4) target bundleno = 99 (0x63), region = 60 }
  0x52   : > { %v1725_v0 = vmov 0.0  }
  0x53   : > { %319 = vst [vmem:[#allocation2 + $0x30] sm:$0xff] %v1725_v0 }
  0x54   : > { %320 = vst [vmem:[#allocation2] sm:$0xff] %v1725_v0 }
  0x55   : > { %321 = vst [vmem:[#allocation2 + $0x58] sm:$0xff] %v1725_v0 }
  0x56   : > { %322 = vst [vmem:[#allocation2 + $0x18] sm:$0xff] %v1725_v0 }
  0x57   : > { %323 = vst [vmem:[#allocation2 + $0x50] sm:$0xff] %v1725_v0 }
  0x58   : > { %324 = vst [vmem:[#allocation2 + $0x68] sm:$0xff] %v1725_v0 }
  0x59   : > { %325 = vst [vmem:[#allocation2 + $0x8] sm:$0xff] %v1725_v0 }
  0x5a   : > { %326 = vst [vmem:[#allocation2 + $0x48] sm:$0xff] %v1725_v0 }
  0x5b   : > { %327 = vst [vmem:[#allocation2 + $0x40] sm:$0xff] %v1725_v0 }
  0x5c   : > { %328 = vst [vmem:[#allocation2 + $0x20] sm:$0xff] %v1725_v0 }
  0x5d   : > { %329 = vst [vmem:[#allocation2 + $0x10] sm:$0xff] %v1725_v0 }
  0x5e   : > { %330 = vst [vmem:[#allocation2 + $0x38] sm:$0xff] %v1725_v0 }
  0x5f   : > { %331 = vst [vmem:[#allocation2 + $0x60] sm:$0xff] %v1725_v0 }
  0x60   : > { %332 = vst [vmem:[#allocation2 + $0x70] sm:$0xff] %v1725_v0 }
  0x61   : > { %333 = vst [vmem:[#allocation2 + $0x78] sm:$0xff] %v1725_v0 }
  0x62   : > { %334 = vst [vmem:[#allocation2 + $0x28] sm:$0xff] %v1725_v0 }
  0x63 PF: > { %s335_s6 = sshra.s32 %s1075_s8, 3  ;;  %v1254_v9 = vld [vmem:[%s1916_s4] sm:$0xff]  ;;  %v1256_v10 = vld [vmem:[%s1916_s4 + $0x10] sm:$0xff]  ;;  %v1255_v13 = vld [vmem:[%s1916_s4 + $0x8] sm:$0xff]  ;;  %s2101_s2 = sld [smem:[#allocation17_spill]] }
  0x64   : > { %s1077_s12 = sshll.u32 %s335_s6, 2  ;;  %v1258_v11 = vld [vmem:[%s1916_s4 + $0x20] sm:$0xff]  ;;  %v1260_v12 = vld [vmem:[%s1916_s4 + $0x30] sm:$0xff]  ;;  %v1257_v14 = vld [vmem:[%s1916_s4 + $0x18] sm:$0xff] }
  0x65   : > { %s1938_s14 = scalar_lea.vmem [#allocation6], %s1077_s12  ;;  %v1259_v15 = vld [vmem:[%s1916_s4 + $0x28] sm:$0xff]  ;;  %v1261_v16 = vld [vmem:[%s1916_s4 + $0x38] sm:$0xff]  ;;  %v355_v17 = vld [vmem:[#allocation2 + $0x30] sm:$0xff] }
  0x66   : > { %v1253_v1 = vld [vmem:[%s1938_s14 + $0x38] sm:$0xff]  ;;  %v1252_v2 = vld [vmem:[%s1938_s14 + $0x30] sm:$0xff]  ;;  %v1251_v3 = vld [vmem:[%s1938_s14 + $0x28] sm:$0xff] }
  0x67   : > { %483 = vmatpush.bf16.msra.mxu0 %v1253_v1  ;;  %1287 = vmatpush.bf16.msra.mxu1 %v1253_v1  ;;  %v1250_v4 = vld [vmem:[%s1938_s14 + $0x20] sm:$0xff]  ;;  %v1249_v5 = vld [vmem:[%s1938_s14 + $0x18] sm:$0xff]  ;;  %v1248_v6 = vld [vmem:[%s1938_s14 + $0x10] sm:$0xff] }
  0x68   : > { %1288 = vmatpush.bf16.msra.mxu2 %v1253_v1  ;;  %1289 = vmatpush.bf16.msra.mxu3 %v1253_v1  ;;  %v1247_v7 = vld [vmem:[%s1938_s14 + $0x8] sm:$0xff]  ;;  %v1246_v8 = vld [vmem:[%s1938_s14] sm:$0xff]  ;;  %v359_v18 = vld [vmem:[#allocation2 + $0x50] sm:$0xff] }
  0x69   : > { %v363_v23 = vld [vmem:[#allocation2 + $0x40] sm:$0xff]  ;;  %v360_v26 = vld [vmem:[#allocation2 + $0x68] sm:$0xff]  ;;  %v368_v36 = vld [vmem:[#allocation2 + $0x70] sm:$0xff]  ;;  %p1142_p1 = scmp.ne.s32.totalorder %s2101_s2, 1 }
  0x6a   : > { %v367_v24 = vld [vmem:[#allocation2 + $0x60] sm:$0xff]  ;;  %v357_v37 = vld [vmem:[#allocation2 + $0x58] sm:$0xff]  ;;  %v361_v38 = vld [vmem:[#allocation2 + $0x8] sm:$0xff]  ;;  %s568_s29 = sshra.s32 (!%p1142_p1), %s1074_s24, 3  ;;  %s2102_s16 = sld [smem:[#allocation25_spill]] (!%p1142_p1) }
  0x6b   : > { %484 = vmatpush.bf16.msra.mxu0 %v1252_v2  ;;  %1290 = vmatpush.bf16.msra.mxu1 %v1252_v2  ;;  %v356_v25 = vld [vmem:[#allocation2] sm:$0xff]  ;;  %v365_v47 = vld [vmem:[#allocation2 + $0x10] sm:$0xff]  ;;  %v369_v48 = vld [vmem:[#allocation2 + $0x78] sm:$0xff]  ;;  %s1143_s17 = sshll.u32 (!%p1142_p1), %s568_s29, 2 }
  0x6c   : > { %1291 = vmatpush.bf16.msra.mxu2 %v1252_v2  ;;  %1292 = vmatpush.bf16.msra.mxu3 %v1252_v2  ;;  %v364_v35 = vld [vmem:[#allocation2 + $0x20] sm:$0xff]  ;;  %v358_v49 = vld [vmem:[#allocation2 + $0x18] sm:$0xff]  ;;  %v362_v50 = vld [vmem:[#allocation2 + $0x48] sm:$0xff]  ;;  %s1959_s1 = scalar_lea.vmem (!%p1142_p1), [#allocation6], %s1143_s17 }
  0x6d   : > { %v366_v59 = vld [vmem:[#allocation2 + $0x38] sm:$0xff]  ;;  %v370_v60 = vld [vmem:[#allocation2 + $0x28] sm:$0xff] }
  0x6f   : > { %485 = vmatpush.bf16.msra.mxu0 %v1251_v3  ;;  %1293 = vmatpush.bf16.msra.mxu1 %v1251_v3 }
  0x70   : > { %1294 = vmatpush.bf16.msra.mxu2 %v1251_v3  ;;  %1295 = vmatpush.bf16.msra.mxu3 %v1251_v3 }
  0x73   : > { %486 = vmatpush.bf16.msra.mxu0 %v1250_v4  ;;  %1296 = vmatpush.bf16.msra.mxu1 %v1250_v4 }
  0x74   : > { %1297 = vmatpush.bf16.msra.mxu2 %v1250_v4  ;;  %1298 = vmatpush.bf16.msra.mxu3 %v1250_v4 }
  0x77   : > { %487 = vmatpush.bf16.msra.mxu0 %v1249_v5  ;;  %1299 = vmatpush.bf16.msra.mxu1 %v1249_v5 }
  0x78   : > { %1300 = vmatpush.bf16.msra.mxu2 %v1249_v5  ;;  %1301 = vmatpush.bf16.msra.mxu3 %v1249_v5 }
  0x7b   : > { %488 = vmatpush.bf16.msra.mxu0 %v1248_v6  ;;  %1302 = vmatpush.bf16.msra.mxu1 %v1248_v6 }
  0x7c   : > { %1303 = vmatpush.bf16.msra.mxu2 %v1248_v6  ;;  %1304 = vmatpush.bf16.msra.mxu3 %v1248_v6 }
  0x7f   : > { %489 = vmatpush.bf16.msra.mxu0 %v1247_v7  ;;  %1305 = vmatpush.bf16.msra.mxu1 %v1247_v7 }
  0x80   : > { %1306 = vmatpush.bf16.msra.mxu2 %v1247_v7  ;;  %1307 = vmatpush.bf16.msra.mxu3 %v1247_v7 }
  0x83   : > { %490 = vmatpush.bf16.msra.mxu0 %v1246_v8  ;;  %1308 = vmatpush.bf16.msra.mxu1 %v1246_v8 }
  0x84   : > { %1309 = vmatpush.bf16.msra.mxu2 %v1246_v8  ;;  %1310 = vmatpush.bf16.msra.mxu3 %v1246_v8 }
  0x86   : > { %491 = vmatmul.bf16.vlgmr.msra.gmra.mxu0 %v1254_v9  ;;  %501 = vmatmul.bf16.vlgmr.msra.gmra.mxu1 %v1256_v10 }
  0x87   : > { %511 = vmatmul.bf16.vlgmr.msra.gmra.mxu2 %v1258_v11  ;;  %521 = vmatmul.bf16.vlgmr.msra.gmra.mxu3 %v1260_v12 }
  0x96   : > { %496 = vmatmul.bf16.gmra.mxu0 %v1255_v13  ;;  %506 = vmatmul.bf16.gmra.mxu1 %v1257_v14 }
  0x97   : > { %516 = vmatmul.bf16.gmra.mxu2 %v1259_v15  ;;  %526 = vmatmul.bf16.gmra.mxu3 %v1261_v16 }
 0x103   : > { %v492_v19 = vpop.f32.mrf.mxu0  ;;  %v502_v20 = vpop.f32.mrf.mxu1 }
 0x104   : > { %v532_v21 = vadd.f32 %v492_v19, %v355_v17  ;;  %v536_v22 = vadd.f32 %v502_v20, %v359_v18 }
 0x106   : > { %548 = vst [vmem:[#allocation2 + $0x30] sm:$0xff] %v532_v21 }
 0x107   : > { %552 = vst [vmem:[#allocation2 + $0x50] sm:$0xff] %v536_v22 }
 0x10a   : > { %v512_v27 = vpop.f32.mrf.mxu2  ;;  %v522_v28 = vpop.f32.mrf.mxu3 }
 0x10b   : > { %v540_v29 = vadd.f32 %v512_v27, %v363_v23  ;;  %v544_v30 = vadd.f32 %v522_v28, %v367_v24  ;;  %v494_v31 = vpop.f32.mrf.mxu0  ;;  %v504_v32 = vpop.f32.mrf.mxu1 }
 0x10c   : > { %v533_v33 = vadd.f32 %v494_v31, %v356_v25  ;;  %v537_v34 = vadd.f32 %v504_v32, %v360_v26 }
 0x10d   : > { %556 = vst [vmem:[#allocation2 + $0x40] sm:$0xff] %v540_v29 }
 0x10e   : > { %560 = vst [vmem:[#allocation2 + $0x60] sm:$0xff] %v544_v30 }
 0x10f   : > { %549 = vst [vmem:[#allocation2] sm:$0xff] %v533_v33 }
 0x110   : > { %553 = vst [vmem:[#allocation2 + $0x68] sm:$0xff] %v537_v34 }
 0x112   : > { %v514_v39 = vpop.f32.mrf.mxu2  ;;  %v524_v40 = vpop.f32.mrf.mxu3 }
 0x113   : > { %v541_v41 = vadd.f32 %v514_v39, %v364_v35  ;;  %v545_v42 = vadd.f32 %v524_v40, %v368_v36  ;;  %v497_v43 = vpop.f32.mrf.mxu0  ;;  %v507_v44 = vpop.f32.mrf.mxu1 }
 0x114   : > { %v534_v45 = vadd.f32 %v497_v43, %v357_v37  ;;  %v538_v46 = vadd.f32 %v507_v44, %v361_v38 }
 0x115   : > { %557 = vst [vmem:[#allocation2 + $0x20] sm:$0xff] %v541_v41 }
 0x116   : > { %561 = vst [vmem:[#allocation2 + $0x70] sm:$0xff] %v545_v42 }
 0x117   : > { %550 = vst [vmem:[#allocation2 + $0x58] sm:$0xff] %v534_v45 }
 0x118   : > { %554 = vst [vmem:[#allocation2 + $0x8] sm:$0xff] %v538_v46 }
 0x11a   : > { %v517_v51 = vpop.f32.mrf.mxu2  ;;  %v527_v52 = vpop.f32.mrf.mxu3 }
 0x11b   : > { %v542_v53 = vadd.f32 %v517_v51, %v365_v47  ;;  %v546_v54 = vadd.f32 %v527_v52, %v369_v48  ;;  %v499_v55 = vpop.f32.mrf.mxu0  ;;  %v509_v56 = vpop.f32.mrf.mxu1 }
 0x11c   : > { %v535_v57 = vadd.f32 %v499_v55, %v358_v49  ;;  %v539_v58 = vadd.f32 %v509_v56, %v362_v50 }
 0x11d   : > { %558 = vst [vmem:[#allocation2 + $0x10] sm:$0xff] %v542_v53 }
 0x11e   : > { %562 = vst [vmem:[#allocation2 + $0x78] sm:$0xff] %v546_v54 }
 0x11f   : > { %551 = vst [vmem:[#allocation2 + $0x18] sm:$0xff] %v535_v57 }
 0x120   : > { %555 = vst [vmem:[#allocation2 + $0x48] sm:$0xff] %v539_v58 }
 0x122   : > { %v519_v61 = vpop.f32.mrf.mxu2  ;;  %v529_v62 = vpop.f32.mrf.mxu3  ;;  %567 = sbr.rel (%p1142_p1) target bundleno = 521 (0x209), region = 64 }
 0x123   : > { %v543_v63 = vadd.f32 %v519_v61, %v366_v59  ;;  %v547_v0 = vadd.f32 %v529_v62, %v370_v60 }
 0x125   : > { %559 = vst [vmem:[#allocation2 + $0x38] sm:$0xff] %v543_v63 }
 0x126   : > { %563 = vst [vmem:[#allocation2 + $0x28] sm:$0xff] %v547_v0 }
 0x127   : > { %v1285_v1 = vld [vmem:[#allocation9 + $0x38] sm:$0xff]  ;;  %v1284_v3 = vld [vmem:[#allocation9 + $0x30] sm:$0xff]  ;;  %v1283_v5 = vld [vmem:[#allocation9 + $0x28] sm:$0xff] }
 0x128   : > { %v1277_v2 = vld [vmem:[#allocation8 + $0x38] sm:$0xff]  ;;  %692 = vmatpush.bf16.msra.mxu0 %v1285_v1  ;;  %1311 = vmatpush.bf16.msra.mxu2 %v1285_v1  ;;  %v1276_v4 = vld [vmem:[#allocation8 + $0x30] sm:$0xff]  ;;  %v1275_v6 = vld [vmem:[#allocation8 + $0x28] sm:$0xff] }
 0x129   : > { %837 = vmatpush.bf16.msra.mxu1 %v1277_v2  ;;  %1319 = vmatpush.bf16.msra.mxu3 %v1277_v2  ;;  %v1282_v7 = vld [vmem:[#allocation9 + $0x20] sm:$0xff]  ;;  %v1281_v9 = vld [vmem:[#allocation9 + $0x18] sm:$0xff]  ;;  %v1280_v11 = vld [vmem:[#allocation9 + $0x10] sm:$0xff] }
 0x12a   : > { %v1274_v8 = vld [vmem:[#allocation8 + $0x20] sm:$0xff]  ;;  %v1273_v10 = vld [vmem:[#allocation8 + $0x18] sm:$0xff]  ;;  %v1272_v12 = vld [vmem:[#allocation8 + $0x10] sm:$0xff] }
 0x12b   : > { %v1279_v13 = vld [vmem:[#allocation9 + $0x8] sm:$0xff]  ;;  %v1278_v15 = vld [vmem:[#allocation9] sm:$0xff]  ;;  %v588_v16 = vld [vmem:[#allocation2 + $0x30] sm:$0xff] }
 0x12c   : > { %693 = vmatpush.bf16.msra.mxu0 %v1284_v3  ;;  %1312 = vmatpush.bf16.msra.mxu2 %v1284_v3  ;;  %v1271_v14 = vld [vmem:[#allocation8 + $0x8] sm:$0xff]  ;;  %v589_v17 = vld [vmem:[#allocation2] sm:$0xff]  ;;  %v590_v25 = vld [vmem:[#allocation2 + $0x58] sm:$0xff] }
 0x12d   : > { %838 = vmatpush.bf16.msra.mxu1 %v1276_v4  ;;  %1320 = vmatpush.bf16.msra.mxu3 %v1276_v4  ;;  %v596_v18 = vld [vmem:[#allocation2 + $0x40] sm:$0xff]  ;;  %v604_v21 = vpack.c.bf16 %v589_v17, %v588_v16  ;;  %v591_v26 = vld [vmem:[#allocation2 + $0x18] sm:$0xff]  ;;  %v598_v27 = vld [vmem:[#allocation2 + $0x10] sm:$0xff] }
 0x12e   : > { %v597_v19 = vld [vmem:[#allocation2 + $0x20] sm:$0xff]  ;;  %v599_v28 = vld [vmem:[#allocation2 + $0x38] sm:$0xff]  ;;  %v605_v29 = vpack.c.bf16 %v591_v26, %v590_v25  ;;  %v1263_v31 = vld [vmem:[%s1959_s1 + $0x8] sm:$0xff] }
 0x12f   : > { %v1270_v20 = vld [vmem:[#allocation8] sm:$0xff]  ;;  %v608_v22 = vpack.c.bf16 %v597_v19, %v596_v18  ;;  %v609_v30 = vpack.c.bf16 %v599_v28, %v598_v27  ;;  %v1267_v32 = vld [vmem:[%s1959_s1 + $0x28] sm:$0xff]  ;;  %v592_v33 = vld [vmem:[#allocation2 + $0x50] sm:$0xff] }
 0x130   : > { %694 = vmatpush.bf16.msra.mxu0 %v1283_v5  ;;  %1313 = vmatpush.bf16.msra.mxu2 %v1283_v5  ;;  %v1262_v23 = vld [vmem:[%s1959_s1] sm:$0xff]  ;;  %v593_v34 = vld [vmem:[#allocation2 + $0x68] sm:$0xff]  ;;  %v601_v36 = vld [vmem:[#allocation2 + $0x70] sm:$0xff] }
 0x131   : > { %839 = vmatpush.bf16.msra.mxu1 %v1275_v6  ;;  %1321 = vmatpush.bf16.msra.mxu3 %v1275_v6  ;;  %v1266_v24 = vld [vmem:[%s1959_s1 + $0x20] sm:$0xff]  ;;  %v606_v37 = vpack.c.bf16 %v593_v34, %v592_v33  ;;  %v1264_v39 = vld [vmem:[%s1959_s1 + $0x10] sm:$0xff]  ;;  %v594_v41 = vld [vmem:[#allocation2 + $0x8] sm:$0xff] }
 0x132   : > { %v600_v35 = vld [vmem:[#allocation2 + $0x60] sm:$0xff]  ;;  %v1268_v40 = vld [vmem:[%s1959_s1 + $0x30] sm:$0xff]  ;;  %v595_v42 = vld [vmem:[#allocation2 + $0x48] sm:$0xff] }
 0x133   : > { %v610_v38 = vpack.c.bf16 %v601_v36, %v600_v35  ;;  %v602_v43 = vld [vmem:[#allocation2 + $0x78] sm:$0xff]  ;;  %v603_v44 = vld [vmem:[#allocation2 + $0x28] sm:$0xff]  ;;  %v607_v45 = vpack.c.bf16 %v595_v42, %v594_v41  ;;  %v1972_v50 = vld [vmem:[%s2102_s16] ss:$0 sm:$0xff] }
 0x134   : > { %695 = vmatpush.bf16.msra.mxu0 %v1282_v7  ;;  %1314 = vmatpush.bf16.msra.mxu2 %v1282_v7  ;;  %v611_v46 = vpack.c.bf16 %v603_v44, %v602_v43  ;;  %v1265_v47 = vld [vmem:[%s1959_s1 + $0x18] sm:$0xff] }
 0x135   : > { %840 = vmatpush.bf16.msra.mxu1 %v1274_v8  ;;  %1322 = vmatpush.bf16.msra.mxu3 %v1274_v8  ;;  %v1269_v48 = vld [vmem:[%s1959_s1 + $0x38] sm:$0xff] }
 0x138   : > { %696 = vmatpush.bf16.msra.mxu0 %v1281_v9  ;;  %1315 = vmatpush.bf16.msra.mxu2 %v1281_v9 }
 0x139   : > { %841 = vmatpush.bf16.msra.mxu1 %v1273_v10  ;;  %1323 = vmatpush.bf16.msra.mxu3 %v1273_v10 }
 0x13c   : > { %697 = vmatpush.bf16.msra.mxu0 %v1280_v11  ;;  %1316 = vmatpush.bf16.msra.mxu2 %v1280_v11 }
 0x13d   : > { %842 = vmatpush.bf16.msra.mxu1 %v1272_v12  ;;  %1324 = vmatpush.bf16.msra.mxu3 %v1272_v12 }
 0x140   : > { %698 = vmatpush.bf16.msra.mxu0 %v1279_v13  ;;  %1317 = vmatpush.bf16.msra.mxu2 %v1279_v13 }
 0x141   : > { %843 = vmatpush.bf16.msra.mxu1 %v1271_v14  ;;  %1325 = vmatpush.bf16.msra.mxu3 %v1271_v14 }
 0x144   : > { %699 = vmatpush.bf16.msra.mxu0 %v1278_v15  ;;  %1318 = vmatpush.bf16.msra.mxu2 %v1278_v15 }
 0x145   : > { %844 = vmatpush.bf16.msra.mxu1 %v1270_v20  ;;  %1326 = vmatpush.bf16.msra.mxu3 %v1270_v20 }
 0x147   : > { %700 = vmatmul.bf16.vlgmr.msra.gmra.mxu0 %v604_v21  ;;  %720 = vmatmul.bf16.vlgmr.msra.gmra.mxu2 %v608_v22 }
 0x148   : > { %845 = vmatmul.bf16.vlgmr.msra.gmra.mxu1 %v1262_v23  ;;  %865 = vmatmul.bf16.vlgmr.msra.gmra.mxu3 %v1266_v24 }
 0x157   : > { %705 = vmatmul.bf16.gmra.mxu0 %v605_v29  ;;  %725 = vmatmul.bf16.gmra.mxu2 %v609_v30 }
 0x158   : > { %850 = vmatmul.bf16.gmra.mxu1 %v1263_v31  ;;  %870 = vmatmul.bf16.gmra.mxu3 %v1267_v32 }
 0x167   : > { %710 = vmatmul.bf16.gmra.mxu0 %v606_v37  ;;  %730 = vmatmul.bf16.gmra.mxu2 %v610_v38 }
 0x168   : > { %855 = vmatmul.bf16.gmra.mxu1 %v1264_v39  ;;  %875 = vmatmul.bf16.gmra.mxu3 %v1268_v40 }
 0x177   : > { %715 = vmatmul.bf16.gmra.mxu0 %v607_v45  ;;  %735 = vmatmul.bf16.gmra.mxu2 %v611_v46 }
 0x178   : > { %860 = vmatmul.bf16.gmra.mxu1 %v1265_v47  ;;  %880 = vmatmul.bf16.gmra.mxu3 %v1269_v48 }
 0x1c4   : > { %v701_v49 = vpop.f32.mrf.mxu0 }
 0x1c5   : > { %v846_v51 = vpop.f32.mrf.mxu1 }
 0x1c6   : > { %v847_v52 = vadd.f32 %v846_v51, %v701_v49 }
 0x1c8   : > { %v890_v53 = vadd.f32 %v1972_v50, %v847_v52 }
 0x1ca   : > { %906 = vst [vmem:[%s1935_s10] sm:$0xff] %v890_v53  ;;  %v721_v54 = vpop.f32.mrf.mxu2 }
 0x1cb   : > { %v866_v55 = vpop.f32.mrf.mxu3 }
 0x1cc   : > { %v867_v56 = vadd.f32 %v866_v55, %v721_v54  ;;  %v703_v57 = vpop.f32.mrf.mxu0 }
 0x1cd   : > { %v848_v58 = vpop.f32.mrf.mxu1 }
 0x1ce   : > { %v898_v59 = vadd.f32 %v1972_v50, %v867_v56  ;;  %v849_v60 = vadd.f32 %v848_v58, %v703_v57 }
 0x1d0   : > { %914 = vst [vmem:[%s1935_s10 + $0x40] sm:$0xff] %v898_v59  ;;  %v891_v61 = vadd.f32 %v1972_v50, %v849_v60 }
 0x1d2   : > { %907 = vst [vmem:[%s1935_s10 + $0x8] sm:$0xff] %v891_v61  ;;  %v723_v62 = vpop.f32.mrf.mxu2 }
 0x1d3   : > { %v868_v63 = vpop.f32.mrf.mxu3 }
 0x1d4   : > { %v869_v0 = vadd.f32 %v868_v63, %v723_v62  ;;  %v706_v1 = vpop.f32.mrf.mxu0 }
 0x1d5   : > { %v851_v2 = vpop.f32.mrf.mxu1 }
 0x1d6   : > { %v899_v3 = vadd.f32 %v1972_v50, %v869_v0  ;;  %v852_v4 = vadd.f32 %v851_v2, %v706_v1 }
 0x1d8   : > { %915 = vst [vmem:[%s1935_s10 + $0x48] sm:$0xff] %v899_v3  ;;  %v892_v5 = vadd.f32 %v1972_v50, %v852_v4 }
 0x1da   : > { %908 = vst [vmem:[%s1935_s10 + $0x10] sm:$0xff] %v892_v5  ;;  %v726_v6 = vpop.f32.mrf.mxu2 }
 0x1db   : > { %v871_v7 = vpop.f32.mrf.mxu3 }
 0x1dc   : > { %v872_v8 = vadd.f32 %v871_v7, %v726_v6  ;;  %v708_v9 = vpop.f32.mrf.mxu0 }
 0x1dd   : > { %v853_v10 = vpop.f32.mrf.mxu1 }
 0x1de   : > { %v900_v11 = vadd.f32 %v1972_v50, %v872_v8  ;;  %v854_v12 = vadd.f32 %v853_v10, %v708_v9 }
 0x1e0   : > { %916 = vst [vmem:[%s1935_s10 + $0x50] sm:$0xff] %v900_v11  ;;  %v893_v13 = vadd.f32 %v1972_v50, %v854_v12 }
 0x1e2   : > { %909 = vst [vmem:[%s1935_s10 + $0x18] sm:$0xff] %v893_v13  ;;  %v728_v14 = vpop.f32.mrf.mxu2 }
 0x1e3   : > { %v873_v15 = vpop.f32.mrf.mxu3 }
 0x1e4   : > { %v874_v16 = vadd.f32 %v873_v15, %v728_v14  ;;  %v711_v17 = vpop.f32.mrf.mxu0 }
 0x1e5   : > { %v856_v18 = vpop.f32.mrf.mxu1 }
 0x1e6   : > { %v901_v19 = vadd.f32 %v1972_v50, %v874_v16  ;;  %v857_v20 = vadd.f32 %v856_v18, %v711_v17 }
 0x1e8   : > { %917 = vst [vmem:[%s1935_s10 + $0x58] sm:$0xff] %v901_v19  ;;  %v894_v21 = vadd.f32 %v1972_v50, %v857_v20 }
 0x1ea   : > { %910 = vst [vmem:[%s1935_s10 + $0x20] sm:$0xff] %v894_v21  ;;  %v731_v22 = vpop.f32.mrf.mxu2 }
 0x1eb   : > { %v876_v23 = vpop.f32.mrf.mxu3 }
 0x1ec   : > { %v877_v24 = vadd.f32 %v876_v23, %v731_v22  ;;  %v713_v25 = vpop.f32.mrf.mxu0 }
 0x1ed   : > { %v858_v26 = vpop.f32.mrf.mxu1 }
 0x1ee   : > { %v902_v27 = vadd.f32 %v1972_v50, %v877_v24  ;;  %v859_v28 = vadd.f32 %v858_v26, %v713_v25 }
 0x1f0   : > { %918 = vst [vmem:[%s1935_s10 + $0x60] sm:$0xff] %v902_v27  ;;  %v895_v29 = vadd.f32 %v1972_v50, %v859_v28 }
 0x1f2   : > { %911 = vst [vmem:[%s1935_s10 + $0x28] sm:$0xff] %v895_v29  ;;  %v733_v30 = vpop.f32.mrf.mxu2 }
 0x1f3   : > { %v878_v31 = vpop.f32.mrf.mxu3 }
 0x1f4   : > { %v879_v32 = vadd.f32 %v878_v31, %v733_v30  ;;  %v716_v33 = vpop.f32.mrf.mxu0 }
 0x1f5   : > { %v861_v34 = vpop.f32.mrf.mxu1 }
 0x1f6   : > { %v903_v35 = vadd.f32 %v1972_v50, %v879_v32  ;;  %v862_v36 = vadd.f32 %v861_v34, %v716_v33 }
 0x1f8   : > { %919 = vst [vmem:[%s1935_s10 + $0x68] sm:$0xff] %v903_v35  ;;  %v896_v37 = vadd.f32 %v1972_v50, %v862_v36 }
 0x1fa   : > { %912 = vst [vmem:[%s1935_s10 + $0x30] sm:$0xff] %v896_v37  ;;  %v736_v38 = vpop.f32.mrf.mxu2 }
 0x1fb   : > { %v881_v39 = vpop.f32.mrf.mxu3 }
 0x1fc   : > { %v882_v40 = vadd.f32 %v881_v39, %v736_v38  ;;  %v718_v41 = vpop.f32.mrf.mxu0 }
 0x1fd   : > { %v863_v42 = vpop.f32.mrf.mxu1 }
 0x1fe   : > { %v904_v43 = vadd.f32 %v1972_v50, %v882_v40  ;;  %v864_v44 = vadd.f32 %v863_v42, %v718_v41 }
 0x200   : > { %920 = vst [vmem:[%s1935_s10 + $0x70] sm:$0xff] %v904_v43  ;;  %v897_v45 = vadd.f32 %v1972_v50, %v864_v44 }
 0x202   : > { %913 = vst [vmem:[%s1935_s10 + $0x38] sm:$0xff] %v897_v45  ;;  %v738_v46 = vpop.f32.mrf.mxu2 }
 0x203   : > { %v883_v47 = vpop.f32.mrf.mxu3 }
 0x204   : > { %v884_v48 = vadd.f32 %v883_v47, %v738_v46 }
 0x206   : > { %v905_v49 = vadd.f32 %v1972_v50, %v884_v48 }
 0x208   : > { %921 = vst [vmem:[%s1935_s10 + $0x78] sm:$0xff] %v905_v49 }
 0x209 PF: > { %s2103_s15 = sld [smem:[#allocation26_spill]]  ;;  %s935_s7 = sshll.u32 %s1935_s10, 4  ;;  %s936_s7 = int_to_ptr.vmem [resolvable:$true] %s935_s7 }
 0x20a   : > { %s923_s6 = scalar_lea.sflag [#allocation5], %s308_s18 }
 0x20f   : > { %s934_s5 = scalar_lea.hbm %s2103_s15, %s1074_s24  ;;  %s1607_s29 = scalar_lea.hbm %s2103_s15, 256 }
 0x210   : > { %s937_s8 = sshll.u32 %s934_s5, 4  ;;  %s938_s8 = int_to_ptr.hbm [resolvable:$true] %s937_s8 }
 0x211   : > { %s1601_s12 = sshra.s32 %s938_s8, 4  ;;  %s1602_s12 = int_to_ptr.hbm [resolvable:$true] %s1601_s12 }
 0x212   : > { %s1603_s14 = scalar_lea.hbm %s1602_s12, 128  ;;  %p1608_p3 = scmp.lt.s32.totalorder %s1602_s12, %s2103_s15 }
 0x213   : > { %p1604_p11 = scmp.ne.s32.totalorder %s1602_s12, %s1603_s14  ;;  %p1609_p5 = scmp.lt.s32.totalorder %s1607_s29, %s1603_s14 }
 0x215   : > { %p1605_p0 = pnand %p1604_p11, %p1828_p6  ;;  %p1610_p7 = por %p1609_p5, %p1608_p3 }
 0x217   : > { %p1606_p2 = pneg %p1605_p0 }
 0x219   : > { %p1611_p8 = pnand %p1610_p7, %p1606_p2 }
 0x21b   : > { %1614 = shalt.err (!%p1611_p8)
}
 0x21c   : > { %s1726_s18 = smov 128   ;;  %s1727_s24 = smov 8  }
 0x21d   : > { %1341 = dma.vmem_to_hbm [thread:$0]  (%p1828_p6), %s936_s7, 2048, %s938_s8, %s923_s6, %s1726_s18, %s1726_s18, %s1727_s24  }
 0x21e PF: > { %s2105_s10 = sld [smem:[#allocation16_spill]]  ;;  %p1368_p9 = scmp.ge.s32.totalorder %s1717_s28, 2 }
 0x220   : > { %p1358_p12 = pnand %p1368_p9, %p1834_p10 }
 0x222   : > { %p1359_p13 = pneg %p1358_p12 }
 0x224   : > { %s952_s13 = sand.u32 1, %s2105_s10  }
 0x225   : > { %s953_s16 = scalar_lea.sflag [#allocation5], %s952_s13 }
 0x226   : > { %1672 = dma.done.wait (%p1359_p13), %s953_s16, 2048  }
 0x227   : > { %1674 = vsyncadd (%p1359_p13), %s953_s16, 4294965248  ;;  %s23_s28 = sadd.s32 1, %s1717_s28   ;;  %s2107_s9 = sld [smem:[#allocation20_spill]] }
 0x228   : > { %p20_p4 = scmp.ge.s32.totalorder %s23_s28, 6   ;;  %s2108_s30 = sld [smem:[#allocation21_spill]] }
 0x229   : > { %s2109_s18 = smov %s1681_s19  ;;  %s2110_s19 = smov %s1685_s20 }
 0x22a   : > { %s2111_s20 = smov %s1898_s11  ;;  %s2112_s21 = smov %s1693_s22 }
 0x22b   : > { %s2113_s22 = smov %s1697_s23  ;;  %s2114_s23 = smov %s1901_s3 }
 0x22c   : > { %s2115_s24 = smov %s1709_s26  ;;  %s2116_s25 = smov %s1713_s27 }
 0x22d   : > { %s2117_s26 = smov %s2107_s9  ;;  %22 = sbr.rel (!%p20_p4) target bundleno = 17 (0x11), region = 107 }
 0x22e   : > { %s2118_s27 = smov %s2108_s30 }
 0x232   :  { %959 = vsyncpa [#allocation4], 1 }
 0x233   :  { %961 = vsyncpa [#allocation4 + $0x1], 1 }
 0x234   :  { %962 = vsyncpa [#allocation7], 1 }
 0x235   :  { %963 = vsyncpa [#allocation10], 1 }
 0x236   :  { %964 = vsyncpa [#allocation5], 1 }
 0x237   :  { %966 = vsyncpa [#allocation5 + $0x1], 1 }

</bundles_post_ra>
